<compile_context>
chip_gen: v7x
topology: tpu7x:2x2x1
jax: 0.10.0
libtpu: 0.0.40
codegen_flags: <defaults>
</compile_context>

<pallas_src>
import functools

import jax
import jax.numpy as jnp
from jax.experimental import pallas as pl
from jax.experimental.pallas import tpu as pltpu

EPS = 1e-5  # PyTorch BatchNorm1d default


def _residual_kernel(x_ref, w_ref, gb_ref, out_ref, *, n_y, n_total, tc):
    """Grid step j:
         j <  n_y : out tile = ReLU(BatchNorm(x @ W[:, tile]))   (compute)
         j >= n_y : out tile = x[:, tile - o]                    (fused residual copy)
    """
    j = pl.program_id(0)

    def compute_block():
        # bf16 cast inside the kernel (VPU; hides under the matmul) — keeps the
        # x DMA at 4 B/elem with no separate convert pass over HBM.
        xb = x_ref[...].astype(jnp.bfloat16)
        h = jnp.dot(xb, w_ref[...], preferred_element_type=jnp.float32)   # [B, tc] f32

        # BatchNorm1d, training mode: biased batch statistics over axis 0.
        inv_b = 1.0 / h.shape[0]                                          # static
        mean = jnp.sum(h, axis=0, keepdims=True) * inv_b                  # [1, tc]
        diff = h - mean
        var = jnp.sum(diff * diff, axis=0, keepdims=True) * inv_b         # [1, tc]

        # Fold gamma into the inverse stddev (single [1, tc] scale); rsqrt -> EUP.
        s = gb_ref[0:1, :] * jax.lax.rsqrt(var + EPS)
        out_ref[...] = jnp.maximum(diff * s + gb_ref[1:2, :], 0.0).astype(out_ref.dtype)

    if n_y == n_total:
        # Unfused fallback: every grid step is a compute step.
        compute_block()
    else:
        @pl.when(j < n_y)
        def _():
            compute_block()

        @pl.when(j >= n_y)
        def _():
            # Residual passthrough: copy the matching x column tile (exact f32).
            col = pl.multiple_of((j - n_y) * tc, tc)
            out_ref[...] = x_ref[:, pl.ds(col, tc)].astype(out_ref.dtype)


def _pick_tile(widths, *, min_steps=2, candidates=(512, 256, 128)):
    """Largest lane-aligned tile dividing every width in `widths`; prefer a grid
    with at least `min_steps` steps so both v7x TensorCores get work."""
    total = sum(widths)
    best = None
    for t in candidates:
        if all(w % t == 0 for w in widths):
            if best is None:
                best = t
            if total // t >= min_steps:
                return t
    return best


def prepare_residual_params(w, gamma, beta, bias=None):
    """One-time parameter preparation (call at init, NOT per forward step).

    * Linear bias is dropped: training-mode BatchNorm subtracts the batch mean
      right after the affine, so a per-feature constant cancels exactly.
    * W is cast to bf16 once (halves the per-call weight DMA); BN math stays f32.
    * gamma/beta are packed into a single [2, o] operand.
    * The output-feature dim is zero-padded to a multiple of 128 so kernel
      stores stay lane-dense for arbitrary CTGAN widths.
    Returns (w_lo [i, o_pad] bf16, gb [2, o_pad] f32).
    """
    del bias  # exactly cancelled by training-mode BatchNorm
    _, o = w.shape
    o_pad = ((o + 127) // 128) * 128
    w_lo = w.astype(jnp.bfloat16)
    gb = jnp.stack([gamma, beta], axis=0).astype(jnp.float32)
    if o_pad != o:
        w_lo = jnp.pad(w_lo, ((0, 0), (0, o_pad - o)))
        gb = jnp.pad(gb, ((0, 0), (0, o_pad - o)))
    return w_lo, gb


def residual_forward(x, w_lo, gb, out_features, *, feature_block=None):
    """x: [B, i] f32; w_lo: [i, o_pad] bf16; gb: [2, o_pad] f32 -> [B, o+i] f32."""
    B, I = x.shape
    O_pad = w_lo.shape[1]
    O = out_features
    assert w_lo.shape[0] == I and gb.shape == (2, O_pad)

    # Fused path: kernel writes the full [B, o+i] output (compute tiles for the
    # first o columns, x-copy tiles for the last i columns) -> no wrapper concat.
    fused = (O == O_pad) and (I % 128 == 0)

    if fused:
        tc = feature_block or _pick_tile((O, I))
        assert tc is not None and O % tc == 0 and I % tc == 0
        n_y = O // tc
        n_total = (O + I) // tc
        out_shape = jax.ShapeDtypeStruct((B, O + I), x.dtype)
        out_cols = O + I
    else:
        # Unfused fallback for unaligned widths: compute padded y, then slice +
        # concat in the wrapper (extra pass only on this path).
        # TODO(synk): masked tail tiles would let the fused path cover this too.
        tc = feature_block or _pick_tile((O_pad,))
        assert tc is not None and O_pad % tc == 0
        n_y = n_total = O_pad // tc
        out_shape = jax.ShapeDtypeStruct((B, O_pad), x.dtype)
        out_cols = O_pad

    kernel = functools.partial(_residual_kernel, n_y=n_y, n_total=n_total, tc=tc)

    cost = pl.CostEstimate(
        flops=2 * B * I * O_pad,
        transcendentals=O_pad,  # one rsqrt per output feature
        bytes_accessed=4 * B * I + 2 * I * O_pad + 8 * O_pad + 4 * B * out_cols,
    )

    y = pl.pallas_call(
        kernel,
        out_shape=out_shape,
        grid=(n_total,),
        in_specs=[
            # Full x resident in VMEM (needed whole for the K-reduction and the
            # passthrough copy); block == full array, so any i/B is legal.
            pl.BlockSpec((B, I), lambda j: (0, 0)),
            # W / gamma-beta tiles; clamp so passthrough steps repeat the last
            # block index (no redundant DMA on the x-copy steps).
            pl.BlockSpec((I, tc), lambda j: (0, jnp.minimum(j, n_y - 1))),
            pl.BlockSpec((2, tc), lambda j: (0, jnp.minimum(j, n_y - 1))),
        ],
        out_specs=pl.BlockSpec((B, tc), lambda j: (0, j)),  # lane-dense tiles
        compiler_params=pltpu.CompilerParams(
            # Shards independent feature tiles across both v7x TensorCores;
            # harmless on v5e/v6e.  NOTE: for very large B (>= 4096) shrink
            # `feature_block` or set vmem_limit_bytes here — v7x VMEM is 64 MiB.
            dimension_semantics=("parallel",),
        ),
        cost_estimate=cost,
    )(x, w_lo, gb)

    if fused:
        return y
    return jnp.concatenate([y[:, :O], x], axis=1)


def residual_reference(x, w, b, gamma, beta):
    """Full PyTorch semantics (including the Linear bias) in f32."""
    h = x @ w + b
    mean = jnp.mean(h, axis=0, keepdims=True)
    var = jnp.mean((h - mean) ** 2, axis=0, keepdims=True)
    y = jnp.maximum((h - mean) / jnp.sqrt(var + EPS) * gamma + beta, 0.0)
    return jnp.concatenate([y, x], axis=1)


if __name__ == "__main__":
    key = jax.random.PRNGKey(0)

    def make_case(k, B, I, O):
        kx, kw, kb, kg, kbt = jax.random.split(k, 5)
        x = jax.random.normal(kx, (B, I), dtype=jnp.float32)
        bound = 1.0 / jnp.sqrt(jnp.float32(I))  # PyTorch Linear init range
        w = jax.random.uniform(kw, (I, O), jnp.float32, -bound, bound)
        b = jax.random.uniform(kb, (O,), jnp.float32, -bound, bound)
        gamma = 1.0 + 0.1 * jax.random.normal(kg, (O,), dtype=jnp.float32)
        beta = 0.1 * jax.random.normal(kbt, (O,), dtype=jnp.float32)
        return x, w, b, gamma, beta

    k1, k2 = jax.random.split(key)

    # Case 1: lane-aligned CTGAN shape (first Residual of the default generator,
    # embedding_dim=128 -> 256): fully fused [B, o+i] output, no wrapper concat.
    B, I, O = 8, 128, 256
    x, w, b, gamma, beta = make_case(k1, B, I, O)
    w_lo, gb = prepare_residual_params(w, gamma, beta, bias=b)      # one-time, at init
    out = jax.block_until_ready(residual_forward(x, w_lo, gb, O))
    ref = residual_reference(x, w, b, gamma, beta)
    assert out.shape == (B, O + I), out.shape
    # Tolerance covers the bf16 MXU operands; the x passthrough is exact f32.
    assert jnp.allclose(out, ref, atol=3e-2, rtol=3e-2), "fused path mismatch"

    # Case 2: unaligned widths (o=192, i=64): padded weights + fallback path.
    B2, I2, O2 = 8, 64, 192
    x2, w2, b2, gamma2, beta2 = make_case(k2, B2, I2, O2)
    w2_lo, gb2 = prepare_residual_params(w2, gamma2, beta2, bias=b2)
    out2 = jax.block_until_ready(residual_forward(x2, w2_lo, gb2, O2))
    ref2 = residual_reference(x2, w2, b2, gamma2, beta2)
    assert out2.shape == (B2, O2 + I2), out2.shape
    assert jnp.allclose(out2, ref2, atol=3e-2, rtol=3e-2), "fallback path mismatch"

    print("KERNEL_OK")
</pallas_src>

<mosaic_0001>
module attributes {stable_mosaic.version = 11 : i64} {
  func.func @_residual_kernel(%arg0: i32, %arg1: memref<8x128xf32, #tpu.memory_space<vmem>>, %arg2: memref<128x128xbf16, #tpu.memory_space<vmem>>, %arg3: memref<2x128xf32, #tpu.memory_space<vmem>>, %arg4: memref<8x128xf32, #tpu.memory_space<vmem>>) attributes {dimension_semantics = [#tpu.dimension_semantics<parallel>], iteration_bounds = array<i64: 3>, scalar_prefetch = 0 : i64, scratch_operands = 0 : i64, tpu.core_type = #tpu.core_type<tc>, window_params = [{pipeline_mode = #tpu.pipeline_mode<synchronous>, transform_indices = @transform_0, window_bounds = array<i64: 8, 128>}, {transform_indices = @transform_1, window_bounds = array<i64: 128, 128>}, {transform_indices = @transform_2, window_bounds = array<i64: 2, 128>}, {transform_indices = @transform_3, window_bounds = array<i64: 8, 128>}]} {
    %c2_i32 = arith.constant 2 : i32
    %0 = arith.cmpi slt, %arg0, %c2_i32 : i32
    %1 = arith.extui %0 : i1 to i32
    %c0_i32 = arith.constant 0 : i32
    %2 = arith.cmpi ne, %1, %c0_i32 : i32
    scf.if %2 {
      %c0 = arith.constant 0 : index
      %c0_2 = arith.constant 0 : index
      %6 = vector.load %arg1[%c0, %c0_2] : memref<8x128xf32, #tpu.memory_space<vmem>>, vector<8x128xf32>
      %7 = arith.truncf %6 : vector<8x128xf32> to vector<8x128xbf16>
      %c0_3 = arith.constant 0 : index
      %c0_4 = arith.constant 0 : index
      %8 = vector.load %arg2[%c0_3, %c0_4] : memref<128x128xbf16, #tpu.memory_space<vmem>>, vector<128x128xbf16>
      %cst = arith.constant dense<0.000000e+00> : vector<8x128xf32>
      %9 = tpu.matmul %7, %8, %cst {dimension_numbers = #tpu.dot_dimension_numbers<[1], [0], [0], [1], [0, 0, 1, 1], [], []>} : vector<8x128xbf16>, vector<128x128xbf16>, vector<8x128xf32> -> vector<8x128xf32>
      %cst_5 = arith.constant dense<0.000000e+00> : vector<128xf32>
      %10 = vector.multi_reduction <add>, %9, %cst_5 [0] : vector<8x128xf32> to vector<128xf32>
      %11 = vector.shape_cast %10 : vector<128xf32> to vector<1x128xf32>
      %cst_6 = arith.constant 1.250000e-01 : f32
      %12 = vector.broadcast %cst_6 : f32 to vector<1x128xf32>
      %13 = arith.mulf %11, %12 : vector<1x128xf32>
      %14 = vector.broadcast %13 : vector<1x128xf32> to vector<8x128xf32>
      %15 = arith.subf %9, %14 : vector<8x128xf32>
      %16 = arith.mulf %15, %15 : vector<8x128xf32>
      %cst_7 = arith.constant dense<0.000000e+00> : vector<128xf32>
      %17 = vector.multi_reduction <add>, %16, %cst_7 [0] : vector<8x128xf32> to vector<128xf32>
      %18 = vector.shape_cast %17 : vector<128xf32> to vector<1x128xf32>
      %cst_8 = arith.constant 1.250000e-01 : f32
      %19 = vector.broadcast %cst_8 : f32 to vector<1x128xf32>
      %20 = arith.mulf %18, %19 : vector<1x128xf32>
      %c0_9 = arith.constant 0 : index
      %c0_10 = arith.constant 0 : index
      %21 = vector.load %arg3[%c0_9, %c0_10] : memref<2x128xf32, #tpu.memory_space<vmem>>, vector<1x128xf32>
      %cst_11 = arith.constant 9.99999974E-6 : f32
      %22 = vector.broadcast %cst_11 : f32 to vector<1x128xf32>
      %23 = arith.addf %20, %22 : vector<1x128xf32>
      %24 = math.rsqrt %23 : vector<1x128xf32>
      %25 = arith.mulf %21, %24 : vector<1x128xf32>
      %26 = vector.broadcast %25 : vector<1x128xf32> to vector<8x128xf32>
      %27 = arith.mulf %15, %26 : vector<8x128xf32>
      %c1 = arith.constant 1 : index
      %c0_12 = arith.constant 0 : index
      %28 = vector.load %arg3[%c1, %c0_12] : memref<2x128xf32, #tpu.memory_space<vmem>>, vector<1x128xf32>
      %29 = vector.broadcast %28 : vector<1x128xf32> to vector<8x128xf32>
      %30 = arith.addf %27, %29 : vector<8x128xf32>
      %cst_13 = arith.constant 0.000000e+00 : f32
      %31 = vector.broadcast %cst_13 : f32 to vector<8x128xf32>
      %32 = arith.maximumf %30, %31 : vector<8x128xf32>
      %c0_14 = arith.constant 0 : index
      %c0_15 = arith.constant 0 : index
      %33 = vector.load %arg4[%c0_14, %c0_15] : memref<8x128xf32, #tpu.memory_space<vmem>>, vector<8x128xf32>
      tpu.vector_store %arg4[%c0_14, %c0_15], %32 {strides = array<i32>} : memref<8x128xf32, #tpu.memory_space<vmem>>, vector<8x128xf32>,
    } else {
    }
    %c2_i32_0 = arith.constant 2 : i32
    %3 = arith.cmpi sge, %arg0, %c2_i32_0 : i32
    %4 = arith.extui %3 : i1 to i32
    %c0_i32_1 = arith.constant 0 : i32
    %5 = arith.cmpi ne, %4, %c0_i32_1 : i32
    scf.if %5 {
      %c2_i32_2 = arith.constant 2 : i32
      %6 = arith.subi %arg0, %c2_i32_2 : i32
      %c128_i32 = arith.constant 128 : i32
      %7 = arith.muli %6, %c128_i32 : i32
      %8 = tpu.assume_multiple %7, 128 : i32
      %c0 = arith.constant 0 : index
      %9 = arith.index_cast %8 : i32 to index
      %10 = vector.load %arg1[%c0, %9] : memref<8x128xf32, #tpu.memory_space<vmem>>, vector<8x128xf32>
      %c0_3 = arith.constant 0 : index
      %c0_4 = arith.constant 0 : index
      %11 = vector.load %arg4[%c0_3, %c0_4] : memref<8x128xf32, #tpu.memory_space<vmem>>, vector<8x128xf32>
      tpu.vector_store %arg4[%c0_3, %c0_4], %10 {strides = array<i32>} : memref<8x128xf32, #tpu.memory_space<vmem>>, vector<8x128xf32>,
    } else {
    }
    return
  }
  func.func @transform_0(%arg0: i32) -> (i32, i32) {
    %c0_i32 = arith.constant 0 : i32
    %c0_i32_0 = arith.constant 0 : i32
    %c0_i32_1 = arith.constant 0 : i32
    return %c0_i32, %c0_i32_0 : i32, i32
  }
  func.func @transform_1(%arg0: i32) -> (i32, i32) {
    %c1_i32 = arith.constant 1 : i32
    %0 = arith.minsi %arg0, %c1_i32 : i32
    %c0_i32 = arith.constant 0 : i32
    %c0_i32_0 = arith.constant 0 : i32
    return %c0_i32, %0 : i32, i32
  }
  func.func @transform_2(%arg0: i32) -> (i32, i32) {
    %c1_i32 = arith.constant 1 : i32
    %0 = arith.minsi %arg0, %c1_i32 : i32
    %c0_i32 = arith.constant 0 : i32
    %c0_i32_0 = arith.constant 0 : i32
    return %c0_i32, %0 : i32, i32
  }
  func.func @transform_3(%arg0: i32) -> (i32, i32) {
    %c0_i32 = arith.constant 0 : i32
    %c0_i32_0 = arith.constant 0 : i32
    return %c0_i32, %arg0 : i32, i32
  }
}

</mosaic_0001>

<bundles_post_ra>
// kernel: tpu_custom_call.1
= control target key start
LH: loop header
LB: loop body
LE: loop exit
PB: predicated region body
PF: predicated region fallthrough
CT: control target
= control target key end

     0   :  { %s1099_s0 = inlined_call_operand.hbm [shape: f32[8,128], index: 0, kind: input, shape index: {}]   ;;  %s1100_s1 = inlined_call_operand.hbm [shape: bf16[128,256], index: 1, kind: input, shape index: {}]   ;;  %s1101_s2 = inlined_call_operand.vmem [shape: f32[2,256], index: 2, kind: input, shape index: {}]   ;;  %s1102_s3 = inlined_call_operand.hbm [shape: f32[8,384], index: 3, kind: output, shape index: {}]  }
   0x1   :  { %1108 = sst [smem:[#allocation11_spill]] %s1099_s0 }
   0x2   :  { %8 = vsyncpa [#allocation3], 0 }
   0x3   :  { %9 = vsyncpa [#allocation6], 0 }
   0x4   :  { %11 = vsyncpa [#allocation6 + $0x1], 0 }
   0x5   :  { %12 = vsyncpa [#allocation4], 0 }
   0x6   :  { %14 = vsyncpa [#allocation4 + $0x1], 0  ;;  %s842_s12 = smov 0   ;;  %s844_s13 = smov 0  }
   0x7   :  { %s846_s14 = smov 0   ;;  %s848_s15 = smov 0  }
   0x8   :  { %s850_s16 = smov 0   ;;  %s852_s17 = smov 0  }
   0x9   :  { %s854_s18 = smov 0  }
   0xa LB: > { %s876_s19 = sadd.s32 4294967295, %s812_s18   ;;  %s504_s20 = sadd.s32 4294967294, %s812_s18   ;;  %s812_s18 = sphi %s854_s18, %s1132_s18   ;;  %s808_s17 = sphi %s852_s17, %s1131_s17   ;;  %s804_s16 = sphi %s850_s16, %s1130_s16   ;;  %s800_s15 = sphi %s848_s15, %s1129_s15   ;;  %s796_s14 = sphi %s846_s14, %s1128_s14   ;;  %s792_s13 = sphi %s844_s13, %s1127_s13   ;;  %s788_s12 = sphi %s842_s12, %s1126_s12  }
   0xb   : > { %s880_s21 = sadd.s32 1, %s812_s18   ;;  %s52_s22 = sadd.s32 1, %s808_s17 }
   0xc   : > { %p59_p0 = scmp.ne.s32.totalorder %s808_s17, %s804_s16  ;;  %p60_p1 = scmp.eq.s32.totalorder %s812_s18, 0 }
   0xd   : > { %p65_p2 = scmp.ne.s32.totalorder %s804_s16, %s800_s15  ;;  %p1103_p3 = scmp.eq.s32.totalorder %s876_s19, 0 }
   0xe   : > { %p888_p4 = por %p60_p1, %p59_p0  ;;  %s105_s24 = ssub.s32 %s812_s18, %s880_s21 }
   0xf   : > { %p896_p5 = por %p1103_p3, %p65_p2  ;;  %p106_p6 = scmp.eq.s32.totalorder %s105_s24, 0 }
  0x10   : > { %s108_s26 = sadd.s32 1, %s796_s14  ;;  %p118_p7 = scmp.ne.s32.totalorder %s796_s14, %s792_s13 }
  0x11   : > { %s1110_s25 = scalar_select %p896_p5, 1, 0 }
  0x12   : > { %s904_s27 = scalar_select %p106_p6, %s796_s14, %s108_s26  }
  0x13   : > { %p119_p8 = scmp.eq.s32.totalorder %s876_s19, 2  ;;  %p124_p9 = scmp.ne.s32.totalorder %s792_s13, %s788_s12 }
  0x14   : > { %p125_p10 = scmp.eq.s32.totalorder %s504_s20, 2  ;;  %p505_p11 = scmp.ge.s32.totalorder %s812_s18, 1 }
  0x15   : > { %p910_p12 = por %p119_p8, %p118_p7  ;;  %p132_p13 = scmp.lt.s32.totalorder %s812_s18, 4 }
  0x16   : > { %p915_p0 = por %p125_p10, %p124_p9  ;;  %s814_s4 = smov [#allocation2]  }
  0x17   : > { %s1111_s28 = scalar_select %p910_p12, 1, 0 }
  0x18   : > { %s1112_s29 = scalar_select %p915_p0, 1, 0 }
  0x19   : > { %p919_p1 = pnand %p505_p11, %p132_p13  ;;  %s145_s5 = sshll.u32 %s814_s4, 4  ;;  %s146_s5 = int_to_ptr.vmem [resolvable:$true] %s145_s5 }
  0x1a   : > { %p585_p6 = scmp.lt.s32.totalorder %s812_s18, 3  ;;  %s156_s8 = sand.u32 1, %s808_s17  }
  0x1b   : > { %s1113_s30 = scalar_select %p919_p1, 1, 0 }
  0x1c   : > { %p572_p2 = pneg %p919_p1  ;;  %p936_p10 = pnand %p585_p6, %p888_p4 }
  0x1d   : > { %s1116_s0 = sld [smem:[#allocation11_spill]] }
  0x1e   : > { %p929_p8 = pnand %p572_p2, %p1103_p3 }
  0x1f   : > { %s1115_s7 = scalar_select %p936_p10, 1, 0 }
  0x20   : > { %p662_p13 = pneg %p929_p8 }
  0x23   : > { %s660_s11 = scalar_lea.hbm %s1116_s0, 128 }
  0x24   : > { %p661_p11 = scmp.ne.s32.totalorder %s1116_s0, %s660_s11  ;;  %p667_p4 = scmp.lt.u32.totalorder %s660_s11, %s1116_s0 }
  0x26   : > { %p663_p2 = pnand %p662_p13, %p661_p11 }
  0x28   : > { %p664_p3 = pneg %p663_p2 }
  0x2a   : > { %p669_p6 = pnand %p667_p4, %p664_p3 }
  0x2c   : > { %672 = shalt.err (!%p669_p6)
}
  0x2d   : > { %s673_s23 = scalar_lea.vmem %s146_s5, 128  ;;  %p681_p12 = scmp.lt.s32.totalorder %s146_s5, %s146_s5 }
  0x2e   : > { %p674_p9 = scmp.ne.s32.totalorder %s146_s5, %s673_s23  ;;  %p682_p5 = scmp.lt.s32.totalorder %s673_s23, %s673_s23 }
  0x30   : > { %p676_p7 = pnand %p674_p9, %p662_p13  ;;  %p683_p1 = por %p682_p5, %p681_p12 }
  0x32   : > { %p677_p0 = pneg %p676_p7 }
  0x34   : > { %p684_p10 = pnand %p683_p1, %p677_p0 }
  0x36   : > { %687 = shalt.err (!%p684_p10)
}
  0x37   : > { %575 = dma.hbm_to_vmem [thread:$0]  (!%p929_p8), %s1116_s0, 128, %s146_s5, [#allocation3]  }
  0x38   : > { %s508_s10 = sshll.u32 %s156_s8, 6  ;;  %p1117_p3 = scmp.lt.s32.totalorder %s812_s18, 1 }
  0x39   : > { %p1118_p5 = scmp.lt.s32.totalorder %s880_s21, 1  ;;  %s160_s5 = scalar_lea.vmem [#allocation5], %s508_s10 }
  0x3a   : > { %s46_s11 = scalar_select %p1117_p3, %s812_s18, 1 }
  0x3b   : > { %s48_s6 = scalar_select %p1118_p5, %s880_s21, 1 }
  0x3c   : > { %s509_s15 = sshll.u32 %s46_s11, 6  ;;  %s168_s4 = sshll.u32 %s160_s5, 4  ;;  %s970_s4 = int_to_ptr.vmem [resolvable:$true] %s168_s4 }
  0x3d   : > { %s49_s20 = ssub.s32 %s46_s11, %s48_s6  ;;  %s968_s23 = scalar_lea.hbm %s1100_s1, %s509_s15 }
  0x3e   : > { %p50_p12 = scmp.eq.s32.totalorder %s49_s20, 0  ;;  %s979_s0 = scalar_lea.sflag [#allocation6], %s156_s8 }
  0x3f   : > { %s688_s11 = scalar_lea.hbm %s968_s23, 1024  ;;  %p1119_p1 = scmp.ne.s32.totalorder %s1115_s7, 0 }
  0x40   : > { %s975_s9 = scalar_select %p50_p12, %s808_s17, %s52_s22  }
  0x41   : > { %p689_p0 = scmp.ne.s32.totalorder %s968_s23, %s688_s11  ;;  %p690_p7 = pneg %p1119_p1 }
  0x42   : > { %s693_s10 = scalar_lea.hbm %s1100_s1, 2048  ;;  %p694_p10 = scmp.lt.u32.totalorder %s968_s23, %s1100_s1 }
  0x43   : > { %p691_p8 = pnand %p690_p7, %p689_p0  ;;  %p695_p11 = scmp.lt.u32.totalorder %s693_s10, %s688_s11 }
  0x44   : > { %p697_p2 = scmp.lt.u32.totalorder %s688_s11, %s968_s23 }
  0x45   : > { %p692_p9 = pneg %p691_p8  ;;  %p696_p13 = por %p695_p11, %p694_p10 }
  0x47   : > { %p698_p4 = por %p697_p2, %p696_p13 }
  0x49   : > { %p699_p6 = pnand %p698_p4, %p692_p9 }
  0x4b   : > { %702 = shalt.err (!%p699_p6)
}
  0x4c   : > { %s703_s22 = scalar_lea.vmem %s970_s4, 1024  ;;  %s815_s8 = smov [#allocation5]  }
  0x4d   : > { %p704_p3 = scmp.ne.s32.totalorder %s970_s4, %s703_s22  ;;  %s708_s26 = sshll.u32 %s815_s8, 4  ;;  %s709_s26 = int_to_ptr.vmem [resolvable:$false] %s708_s26 }
  0x4e   : > { %s710_s5 = scalar_lea.vmem %s709_s26, 2048  ;;  %p711_p0 = scmp.lt.s32.totalorder %s970_s4, %s709_s26 }
  0x4f   : > { %p706_p5 = pnand %p704_p3, %p690_p7  ;;  %p712_p8 = scmp.lt.s32.totalorder %s710_s5, %s703_s22 }
  0x51   : > { %p707_p12 = pneg %p706_p5  ;;  %p713_p10 = por %p712_p8, %p711_p0 }
  0x53   : > { %p714_p11 = pnand %p713_p10, %p707_p12 }
  0x55   : > { %717 = shalt.err (!%p714_p11)
}
  0x56   : > { %s816_s11 = smov 128   ;;  %s817_s6 = smov 64  }
  0x57   : > { %s818_s15 = smov 4   ;;  %p1120_p7 = scmp.ne.s32.totalorder %s1113_s30, 0 }
  0x58   : > { %579 = dma.hbm_to_vmem [thread:$0]  (!%p1119_p1), %s968_s23, 1024, %s970_s4, %s979_s0, %s816_s11, %s817_s6, %s818_s15  }
  0x59   : > { %191 = sbr.rel (%p1120_p7) target bundleno = 439 (0x1b7), region = 32  ;;  %p1121_p9 = scmp.eq.s32.totalorder (!%p1120_p7), %s876_s19, 0 }
  0x60   : > { %775 = dma.done.wait (%p1121_p9), [#allocation3], 128   ;;  %p1122_p13 = pmov %p1121_p9 }
  0x61   : > { %s197_s10 = sand.u32 1, %s804_s16   ;;  %p1123_p2 = scmp.ne.s32.totalorder %s1110_s25, 0 }
  0x62   : > { %777 = vsyncadd (%p1122_p13), [#allocation3], 4294967168  ;;  %s512_s20 = sshll.u32 %s197_s10, 6  ;;  %s198_s24 = scalar_lea.sflag [#allocation6], %s197_s10 }
  0x63   : > { %s1014_s22 = scalar_lea.vmem [#allocation5], %s512_s20 }
  0x64   : > { %779 = dma.done.wait (%p1123_p2), %s198_s24, 1024  }
  0x65   : > { %781 = vsyncadd (%p1123_p2), %s198_s24, 4294966272  ;;  %s227_s0 = sand.u32 1, %s792_s13   ;;  %p232_p1 = scmp.lt.s32.totalorder %s876_s19, 1 }
  0x66   : > { %s513_s30 = sshll.u32 %s227_s0, 3  ;;  %p518_p4 = scmp.ge.s32.totalorder %s876_s19, 2 }
  0x67   : > { %s233_s7 = scalar_select %p232_p1, %s876_s19, 1 }
  0x68   : > { %s1030_s5 = scalar_lea.vmem [#allocation7], %s513_s30  ;;  %244 = sbr.rel (%p518_p4) target bundleno = 405 (0x195), region = 44  ;;  %v650_v0 = vld [vmem:[%s1014_s22] sm:$0xff] (!%p518_p4)   ;;  %v819_v1 = vmov (!%p518_p4), 0.0   ;;  %v651_v2 = vld [vmem:[%s1014_s22 + $0x8] sm:$0xff] (!%p518_p4)   ;;  %vm820_vm0 = vmmov (!%p518_p4), 0   ;;  %v371_v32 = vlaneseq (!%p518_p4) }
  0x69   : > { %s1134_s7 = smov (!%p232_p1, %s233_s7), 1  ;;  %544 = vmatprep.subr.bf16.mxu0 (!%p518_p4), %v819_v1  ;;  %560 = vmatprep.mubr.msk.bf16.mxu0 (!%p518_p4), %vm820_vm0, %v819_v1  ;;  %v652_v3 = vld [vmem:[%s1014_s22 + $0x10] sm:$0xff] (!%p518_p4)   ;;  %v653_v4 = vld [vmem:[%s1014_s22 + $0x18] sm:$0xff] (!%p518_p4)   ;;  %v654_v5 = vld [vmem:[%s1014_s22 + $0x20] sm:$0xff] (!%p518_p4)  }
  0x6a   : > { %s517_s23 = sshll.u32 %s1134_s7, 1  ;;  %545 = vmatpush3.bf16.msra.mxu0 (!%p518_p4), %v650_v0  ;;  %v655_v6 = vld [vmem:[%s1014_s22 + $0x28] sm:$0xff] (!%p518_p4)   ;;  %v656_v7 = vld [vmem:[%s1014_s22 + $0x30] sm:$0xff] (!%p518_p4)   ;;  %v657_v8 = vld [vmem:[%s1014_s22 + $0x38] sm:$0xff] (!%p518_p4)   ;;  %v372_v33 = vshrl.u32 (!%p518_p4), %v371_v32, 7 }
  0x6b   : > { %s1028_s26 = scalar_lea.vmem %s1101_s2, %s517_s23  ;;  %546 = vmatprep.subr.bf16.mxu0 (!%p518_p4), %v819_v1  ;;  %v245_v9 = vld [vmem:[#allocation2] sm:$0xff] (!%p518_p4) }
  0x6c   : > { %v246_v10 = vpack.c.bf16 (!%p518_p4), %v245_v9, %v245_v9  ;;  %v367_v34 = vld [vmem:[%s1028_s26] sm:$0x1] (!%p518_p4)  ;;  %v373_v35 = vsub.s32 (!%p518_p4), 0, %v372_v33  ;;  %v527_v39 = vld [vmem:[%s1028_s26 + $0x1] ss:$0 sm:$0xff] (!%p518_p4) }
  0x6e   : > { %547 = vmatpush3.bf16.msra.mxu0 (!%p518_p4), %v651_v2 }
  0x6f   : > { %548 = vmatprep.subr.bf16.mxu0 %v819_v1 }
  0x72   : > { %549 = vmatpush3.bf16.msra.mxu0 %v652_v3 }
  0x73   : > { %550 = vmatprep.subr.bf16.mxu0 %v819_v1 }
  0x76   : > { %551 = vmatpush3.bf16.msra.mxu0 %v653_v4 }
  0x77   : > { %552 = vmatprep.subr.bf16.mxu0 %v819_v1 }
  0x7a   : > { %553 = vmatpush3.bf16.msra.mxu0 %v654_v5 }
  0x7b   : > { %554 = vmatprep.subr.bf16.mxu0 %v819_v1 }
  0x7e   : > { %555 = vmatpush3.bf16.msra.mxu0 %v655_v6 }
  0x7f   : > { %556 = vmatprep.subr.bf16.mxu0 %v819_v1 }
  0x82   : > { %557 = vmatpush3.bf16.msra.mxu0 %v656_v7 }
  0x83   : > { %558 = vmatprep.subr.bf16.mxu0 %v819_v1 }
  0x86   : > { %559 = vmatpush3.bf16.msra.mxu0 %v657_v8 }
  0x89   : > { %561 = vmatmul.mubr.bf16.vlgmr.msra.gmra.mrb[0].mxu0 %v246_v10 }
 0x15c   : > { %v345_v11 = vpop.f32.mrb[0].mxu0 }
 0x15d   : > { %v351_v12 = vrot.slane %v345_v11, 4  ;;  %v562_v13 = vpop.f32.mrb[1].mxu0 }
 0x15e   : > { %v348_v14 = vpop.f32.mrb[2].mxu0 }
 0x15f   : > { %v352_v15 = vadd.f32 %v351_v12, %v345_v11  ;;  %v563_v16 = vpop.f32.mrb[3].mxu0 }
 0x161   : > { %v353_v17 = vrot.slane %v352_v15, 2 }
 0x163   : > { %v354_v18 = vadd.f32 %v353_v17, %v352_v15 }
 0x165   : > { %v355_v19 = vrot.slane %v354_v18, 1 }
 0x167   : > { %v356_v20 = vadd.f32 %v355_v19, %v354_v18 }
 0x169   : > { %v357_v21 = vmul.f32 0.125, %v356_v20 }
 0x16b   : > { %v358_v22 = vsub.f32 %v345_v11, %v357_v21 }
 0x16d   : > { %v359_v23 = vmul.f32 %v358_v22, %v358_v22 }
 0x16f   : > { %v360_v24 = vrot.slane %v359_v23, 4 }
 0x171   : > { %v361_v25 = vadd.f32 %v360_v24, %v359_v23 }
 0x173   : > { %v362_v26 = vrot.slane %v361_v25, 2 }
 0x175   : > { %v363_v27 = vadd.f32 %v362_v26, %v361_v25 }
 0x177   : > { %v364_v28 = vrot.slane %v363_v27, 1 }
 0x179   : > { %v365_v29 = vadd.f32 %v364_v28, %v363_v27 }
 0x17b   : > { %v366_v30 = vmul.f32 0.125, %v365_v29 }
 0x17d   : > { %v368_v31 = vadd.f32 1e-05, %v366_v30 }
 0x17f   : > { %658 = vrsqrt.f32 %v368_v31 }
 0x189   : > { %v659_v36 = vpop.eup %658 }
 0x18a   : > { %v370_v37 = vmul.f32 %v659_v36, %v367_v34 }
 0x18c   : > { %v374_v38 = vrot.slane %v370_v37, %v373_v35 }
 0x18e   : > { %v375_v40 = vmul.f32 %v374_v38, %v358_v22 }
 0x190   : > { %v381_v41 = vadd.f32 %v527_v39, %v375_v40 }
 0x192   : > { %v382_v42 = vmax.f32 %v381_v41, 0.0 }
 0x194   : > { %383 = vst [vmem:[%s1030_s5] sm:$0xff] %v382_v42 }
 0x195 PF: > { %p528_p6 = scmp.lt.s32.totalorder %s876_s19, 2 }
 0x196   : > { %s529_s25 = sadd.s32 (!%p528_p6), 4294967294, %s876_s19 }
 0x197   : > { %387 = sbr.rel (%p528_p6) target bundleno = 414 (0x19e), region = 48  ;;  %s530_s11 = sshll.u32 (!%p528_p6), %s529_s25, 7 }
 0x198   : > { %s390_s6 = sshra.s32 (!%p528_p6), %s530_s11, 7 }
 0x199   : > { %s392_s15 = scalar_lea.vmem (!%p528_p6), [#allocation2], %s390_s6 }
 0x19a   : > { %v393_v43 = vld [vmem:[%s392_s15] sm:$0xff] (!%p528_p6) }
 0x19b   : > { %394 = vst [vmem:[%s1030_s5] sm:$0xff] (!%p528_p6), %v393_v43 }
 0x19e PF: > { %s532_s10 = sshll.u32 %s876_s19, 7  ;;  %s409_s30 = sshll.u32 %s1030_s5, 4  ;;  %s410_s30 = int_to_ptr.vmem [resolvable:$true] %s409_s30 }
 0x19f   : > { %s1051_s22 = scalar_lea.hbm %s1102_s3, %s532_s10  ;;  %s396_s7 = scalar_lea.sflag [#allocation4], %s227_s0 }
 0x1a0   : > { %s718_s23 = scalar_lea.vmem %s410_s30, 128  ;;  %p1124_p5 = scmp.ne.s32.totalorder %s1111_s28, 0 }
 0x1a1   : > { %p719_p3 = scmp.ne.s32.totalorder %s410_s30, %s718_s23  ;;  %s821_s4 = smov [#allocation7]  }
 0x1a2   : > { %s722_s8 = sshll.u32 %s821_s4, 4  ;;  %s723_s8 = int_to_ptr.vmem [resolvable:$false] %s722_s8 }
 0x1a3   : > { %p720_p12 = pnand %p719_p3, %p1124_p5  ;;  %s724_s26 = scalar_lea.vmem %s723_s8, 256 }
 0x1a4   : > { %p725_p8 = scmp.lt.s32.totalorder %s410_s30, %s723_s8  ;;  %p726_p10 = scmp.lt.s32.totalorder %s724_s26, %s718_s23 }
 0x1a5   : > { %p721_p0 = pneg %p720_p12 }
 0x1a6   : > { %p727_p11 = por %p726_p10, %p725_p8 }
 0x1a8   : > { %p728_p7 = pnand %p727_p11, %p721_p0 }
 0x1aa   : > { %731 = shalt.err (!%p728_p7)
}
 0x1ab   : > { %s732_s19 = scalar_lea.hbm %s1051_s22, 128  ;;  %s736_s25 = scalar_lea.hbm %s1102_s3, 384 }
 0x1ac   : > { %p733_p9 = scmp.ne.s32.totalorder %s1051_s22, %s732_s19  ;;  %p737_p1 = scmp.lt.u32.totalorder %s1051_s22, %s1102_s3 }
 0x1ad   : > { %p738_p4 = scmp.lt.u32.totalorder %s736_s25, %s732_s19  ;;  %p740_p3 = scmp.lt.u32.totalorder %s732_s19, %s1051_s22 }
 0x1ae   : > { %p734_p13 = pnand %p733_p9, %p1124_p5 }
 0x1af   : > { %p739_p6 = por %p738_p4, %p737_p1 }
 0x1b0   : > { %p735_p2 = pneg %p734_p13 }
 0x1b1   : > { %p741_p12 = por %p740_p3, %p739_p6 }
 0x1b3   : > { %p742_p0 = pnand %p741_p12, %p735_p2 }
 0x1b5   : > { %745 = shalt.err (!%p742_p0)
}
 0x1b6   : > { %570 = dma.vmem_to_hbm [thread:$0]  (%p1124_p5), %s410_s30, 128, %s1051_s22, %s396_s7  }
 0x1b7 PF: > { %p587_p8 = scmp.ge.s32.totalorder %s812_s18, 2  ;;  %s421_s15 = sand.u32 1, %s788_s12  }
 0x1b8   : > { %p1125_p10 = scmp.ne.s32.totalorder %s1112_s29, 0  ;;  %s422_s10 = scalar_lea.sflag [#allocation4], %s421_s15 }
 0x1ba   : > { %p581_p11 = pnand %p587_p8, %p1125_p10 }
 0x1bc   : > { %783 = dma.done.wait (!%p581_p11), %s422_s10, 128  }
 0x1bd   : > { %785 = vsyncadd (!%p581_p11), %s422_s10, 4294967168  ;;  %p17_p5 = scmp.ge.s32.totalorder %s880_s21, 5   ;;  %s1126_s12 = smov %s792_s13 }
 0x1be   : > { %s1127_s13 = smov %s796_s14  ;;  %s1128_s14 = smov %s904_s27 }
 0x1bf   : > { %s1129_s15 = smov %s804_s16  ;;  %s1130_s16 = smov %s808_s17 }
 0x1c0   : > { %s1131_s17 = smov %s975_s9  ;;  %s1132_s18 = smov %s880_s21 }
 0x1c1   :  { %19 = sbr.rel (!%p17_p5) target bundleno = 10 (0xa), region = 94 }
 0x1c8   :  { %427 = vsyncpa [#allocation3], 1 }
 0x1c9   :  { %429 = vsyncpa [#allocation3 + $0x1], 1 }
 0x1ca   :  { %430 = vsyncpa [#allocation6], 1 }
 0x1cb   :  { %432 = vsyncpa [#allocation6 + $0x1], 1 }
 0x1cc   :  { %433 = vsyncpa [#allocation4], 1 }
 0x1cd   :  { %435 = vsyncpa [#allocation4 + $0x1], 1 }

</bundles_post_ra>
